<compile_context>
chip_gen: v6e
topology: v6e:2x2x1
jax: 0.10.0
libtpu: 0.0.40
codegen_flags: <defaults>
</compile_context>

<pallas_src>
import functools
import math

import jax
import jax.numpy as jnp
from jax import lax
from jax.experimental import pallas as pl
from jax.experimental.pallas import tpu as pltpu


def _layernorm(v, g, b, eps=1e-5):
    mean = jnp.mean(v, axis=-1, keepdims=True)
    var = jnp.mean((v - mean) ** 2, axis=-1, keepdims=True)
    return (v - mean) * lax.rsqrt(var + eps) * g + b


def gat_layer_kernel(
    x_ref,       # (N, D)  f32   (batch dim squeezed by BlockSpec)
    adj_ref,     # (N, N)  int8
    wqkv_ref,    # (D, 3*H*d_k)  bf16  fused q/k/v projection weight
    bqkv_ref,    # (1, 3*H*d_k)  f32   fused q/k/v projection bias
    fcw_ref,     # (H*d_k, D)    bf16  attention output projection
    wffn_ref,    # (2, D, D)     bf16  [w1, w2] of the position-wise FFN
    vecs_ref,    # (7, D)        f32   [fcb, ln1g, ln1b, b1, b2, ln2g, ln2b]
    out_ref,     # (N, D)  f32
    *, nheads, d_k,
):
    N, D = x_ref.shape
    Hd = nheads * d_k

    x = x_ref[...].astype(jnp.float32)                       # (N, D)
    x_bf = x.astype(jnp.bfloat16)

    # ---- fused Q/K/V projection: bf16 operands, f32 MXU accumulation -----
    qkv = jnp.dot(x_bf, wqkv_ref[...], preferred_element_type=jnp.float32)
    qkv = qkv + bqkv_ref[...]
    inv_temp = jnp.float32(1.0 / math.sqrt(float(d_k)))
    q = (qkv[:, 0:Hd] * inv_temp).astype(jnp.bfloat16)       # fold 1/sqrt(d_k)
    k = qkv[:, Hd:2 * Hd].astype(jnp.bfloat16)
    v = qkv[:, 2 * Hd:3 * Hd].astype(jnp.bfloat16)

    # additive adjacency-mask bias, hoisted out of the head loop
    adj = adj_ref[...].astype(jnp.float32)                   # int8 -> f32
    mbias = jnp.where(adj != 0.0, jnp.float32(0.0), jnp.float32(-1e9))

    fcw = fcw_ref[...]                                       # (Hd, D) bf16

    # ---- masked multi-head attention; output projection accumulated ------
    # per head (removes the (N, Hd) concat scratch and its masked stores).
    attn_out = jnp.zeros((N, D), jnp.float32)
    for h in range(nheads):                                  # small static H
        c0 = h * d_k
        qh = q[:, c0:c0 + d_k]
        kh = k[:, c0:c0 + d_k]
        vh = v[:, c0:c0 + d_k]
        # q @ k^T without a value-level transpose: contract last dims
        s = lax.dot_general(qh, kh, (((1,), (1,)), ((), ())),
                            preferred_element_type=jnp.float32) + mbias
        s = s - jnp.max(s, axis=-1, keepdims=True)
        p = jnp.exp(s)
        attn = p * pl.reciprocal(jnp.sum(p, axis=-1, keepdims=True),
                                 approx=True)
        ctx = jnp.dot(attn.astype(jnp.bfloat16), vh,
                      preferred_element_type=jnp.float32)    # (N, d_k)
        attn_out = attn_out + jnp.dot(ctx.astype(jnp.bfloat16),
                                      fcw[c0:c0 + d_k, :],
                                      preferred_element_type=jnp.float32)

    fcb = vecs_ref[0:1]
    ln1g = vecs_ref[1:2]
    ln1b = vecs_ref[2:3]
    b1 = vecs_ref[3:4]
    b2 = vecs_ref[4:5]
    ln2g = vecs_ref[5:6]
    ln2b = vecs_ref[6:7]

    h1 = _layernorm(attn_out + fcb + x, ln1g, ln1b)

    # ---- position-wise feed-forward (1x1 conv == linear) -----------------
    hid = jnp.maximum(
        jnp.dot(h1.astype(jnp.bfloat16), wffn_ref[0],
                preferred_element_type=jnp.float32) + b1, 0.0)
    ffn = jnp.dot(hid.astype(jnp.bfloat16), wffn_ref[1],
                  preferred_element_type=jnp.float32) + b2
    out = _layernorm(ffn + h1, ln2g, ln2b)

    out_ref[...] = out.astype(out_ref.dtype)


def gat_layer(x, adj_i8, packed_params, *, nheads, d_k):
    """x: (B, N, D) f32, adj_i8: (B, N, N) int8."""
    B, N, D = x.shape
    w_qkv, b_qkv, fcw, w_ffn, vecs = packed_params

    def per_batch(tail):
        nt = len(tail)
        return pl.BlockSpec((None,) + tail,
                            lambda b, _nt=nt: (b,) + (0,) * _nt)

    def resident(shape):
        nd = len(shape)
        return pl.BlockSpec(shape, lambda b, _nd=nd: (0,) * _nd)

    kernel = functools.partial(gat_layer_kernel, nheads=nheads, d_k=d_k)

    out = pl.pallas_call(
        kernel,
        out_shape=jax.ShapeDtypeStruct((B, N, D), jnp.float32),
        grid=(B,),
        in_specs=[
            per_batch((N, D)),          # x          (pipelined per batch)
            per_batch((N, N)),          # adj int8   (pipelined per batch)
            resident(w_qkv.shape),      # weights stay VMEM-resident
            resident(b_qkv.shape),
            resident(fcw.shape),
            resident(w_ffn.shape),
            resident(vecs.shape),
        ],
        out_specs=per_batch((N, D)),
        compiler_params=pltpu.CompilerParams(
            dimension_semantics=("parallel",),      # v7x: shard over both TCs
            vmem_limit_bytes=32 * 1024 * 1024),     # safe on v7x's 64 MiB
    )(x, adj_i8, w_qkv, b_qkv, fcw, w_ffn, vecs)
    return out


def init_params(key, output_dim, nheads):
    d_k = output_dim // 4
    Hd = nheads * d_k
    ks = jax.random.split(key, 6)
    s = 0.1
    wq = jax.random.normal(ks[0], (output_dim, Hd), jnp.float32) * s
    wk = jax.random.normal(ks[1], (output_dim, Hd), jnp.float32) * s
    wv = jax.random.normal(ks[2], (output_dim, Hd), jnp.float32) * s
    fcw = jax.random.normal(ks[3], (Hd, output_dim), jnp.float32) * s
    w1 = jax.random.normal(ks[4], (output_dim, output_dim), jnp.float32) * s
    w2 = jax.random.normal(ks[5], (output_dim, output_dim), jnp.float32) * s

    # packed / fused parameter layout consumed by the kernel; matmul weights
    # are stored bf16 (half the HBM DMA bytes, native MXU rate).
    w_qkv = jnp.concatenate([wq, wk, wv], axis=1).astype(jnp.bfloat16)
    b_qkv = jnp.zeros((1, 3 * Hd), jnp.float32)               # [bq|bk|bv]
    fcw_bf = fcw.astype(jnp.bfloat16)
    w_ffn = jnp.stack([w1, w2], axis=0).astype(jnp.bfloat16)  # (2, D, D)
    vecs = jnp.stack([
        jnp.zeros((output_dim,), jnp.float32),   # fc bias
        jnp.ones((output_dim,), jnp.float32),    # ln1 gamma
        jnp.zeros((output_dim,), jnp.float32),   # ln1 beta
        jnp.zeros((output_dim,), jnp.float32),   # ffn b1
        jnp.zeros((output_dim,), jnp.float32),   # ffn b2
        jnp.ones((output_dim,), jnp.float32),    # ln2 gamma
        jnp.zeros((output_dim,), jnp.float32),   # ln2 beta
    ], axis=0)                                                # (7, D)
    return (w_qkv, b_qkv, fcw_bf, w_ffn, vecs)


def gat_layer_reference(x, adj, params, *, nheads, d_k):
    """Pure-JAX f32 reference matching the torch module semantics."""
    w_qkv, b_qkv, fcw, w_ffn, vecs = params
    B, N, D = x.shape
    Hd = nheads * d_k
    w_qkv = w_qkv.astype(jnp.float32)
    fcw = fcw.astype(jnp.float32)
    w_ffn = w_ffn.astype(jnp.float32)

    qkv = jnp.einsum('bnd,de->bne', x, w_qkv) + b_qkv
    q = qkv[..., 0:Hd] / jnp.sqrt(jnp.float32(d_k))
    k = qkv[..., Hd:2 * Hd]
    v = qkv[..., 2 * Hd:3 * Hd]
    qh = q.reshape(B, N, nheads, d_k).transpose(0, 2, 1, 3)
    kh = k.reshape(B, N, nheads, d_k).transpose(0, 2, 1, 3)
    vh = v.reshape(B, N, nheads, d_k).transpose(0, 2, 1, 3)
    s = jnp.einsum('bhqd,bhkd->bhqk', qh, kh)
    s = jnp.where((adj != 0)[:, None], s, -1e9)
    p = jax.nn.softmax(s, axis=-1)
    ctx = jnp.einsum('bhqk,bhkd->bhqd', p, vh)
    concat = ctx.transpose(0, 2, 1, 3).reshape(B, N, Hd)

    fcb, ln1g, ln1b, b1, b2, ln2g, ln2b = [vecs[i] for i in range(7)]
    attn_out = concat @ fcw + fcb
    h1 = _layernorm(attn_out + x, ln1g, ln1b)
    hid = jax.nn.relu(h1 @ w_ffn[0] + b1)
    ffn = hid @ w_ffn[1] + b2
    return _layernorm(ffn + h1, ln2g, ln2b)


if __name__ == "__main__":
    # Small shapes consistent with the module: output_dim=32, nheads=4,
    # node (graph nodes) = 8, batch = 2.  d_k = output_dim // 4 = 8.
    B, N, D, H = 2, 8, 32, 4
    d_k = D // 4

    key = jax.random.PRNGKey(0)
    kx, kadj, kp = jax.random.split(key, 3)

    x = jax.random.normal(kx, (B, N, D), jnp.float32)
    # random adjacency with self loops
    adj = (jax.random.uniform(kadj, (B, N, N)) > 0.5).astype(jnp.float32)
    adj = jnp.maximum(adj, jnp.eye(N, dtype=jnp.float32)[None])
    adj_i8 = adj.astype(jnp.int8)           # int8 adjacency for the kernel

    params = init_params(kp, D, H)

    # TODO(synk): dropout layers from the torch module are identity here
    # (dropout=0); stateful-PRNG dropout would be needed for dropout > 0.
    out = gat_layer(x, adj_i8, params, nheads=H, d_k=d_k)
    out = jax.block_until_ready(out)
    assert out.shape == (B, N, D)

    # Loose tolerance vs. the f32 reference: kernel uses bf16 matmul operands
    # (f32 accumulation) and an approx softmax reciprocal.
    ref = gat_layer_reference(x, adj, params, nheads=H, d_k=d_k)
    max_err = float(jnp.max(jnp.abs(out - ref)))
    assert max_err < 0.1, f"max abs error {max_err}"

    print("KERNEL_OK")
</pallas_src>

<mosaic_0001>
module attributes {stable_mosaic.version = 11 : i64} {
  func.func @gat_layer_kernel(%arg0: i32, %arg1: memref<1x8x32xf32, #tpu.memory_space<vmem>>, %arg2: memref<1x8x8xi8, #tpu.memory_space<vmem>>, %arg3: memref<32x96xbf16, #tpu.memory_space<vmem>>, %arg4: memref<1x96xf32, #tpu.memory_space<vmem>>, %arg5: memref<32x32xbf16, #tpu.memory_space<vmem>>, %arg6: memref<2x32x32xbf16, #tpu.memory_space<vmem>>, %arg7: memref<7x32xf32, #tpu.memory_space<vmem>>, %arg8: memref<1x8x32xf32, #tpu.memory_space<vmem>>) attributes {dimension_semantics = [#tpu.dimension_semantics<parallel>], iteration_bounds = array<i64: 2>, scalar_prefetch = 0 : i64, scratch_operands = 0 : i64, tpu.core_type = #tpu.core_type<tc>, window_params = [{transform_indices = @transform_0, window_bounds = array<i64: 1, 8, 32>}, {transform_indices = @transform_1, window_bounds = array<i64: 1, 8, 8>}, {pipeline_mode = #tpu.pipeline_mode<synchronous>, transform_indices = @transform_2, window_bounds = array<i64: 32, 96>}, {pipeline_mode = #tpu.pipeline_mode<synchronous>, transform_indices = @transform_3, window_bounds = array<i64: 1, 96>}, {pipeline_mode = #tpu.pipeline_mode<synchronous>, transform_indices = @transform_4, window_bounds = array<i64: 32, 32>}, {pipeline_mode = #tpu.pipeline_mode<synchronous>, transform_indices = @transform_5, window_bounds = array<i64: 2, 32, 32>}, {pipeline_mode = #tpu.pipeline_mode<synchronous>, transform_indices = @transform_6, window_bounds = array<i64: 7, 32>}, {transform_indices = @transform_7, window_bounds = array<i64: 1, 8, 32>}]} {
    %c0 = arith.constant 0 : index
    %c0_0 = arith.constant 0 : index
    %c0_1 = arith.constant 0 : index
    %0 = vector.load %arg1[%c0, %c0_0, %c0_1] : memref<1x8x32xf32, #tpu.memory_space<vmem>>, vector<1x8x32xf32>
    %1 = vector.shape_cast %0 : vector<1x8x32xf32> to vector<8x32xf32>
    %2 = arith.truncf %1 : vector<8x32xf32> to vector<8x32xbf16>
    %c0_2 = arith.constant 0 : index
    %c0_3 = arith.constant 0 : index
    %3 = vector.load %arg3[%c0_2, %c0_3] : memref<32x96xbf16, #tpu.memory_space<vmem>>, vector<32x96xbf16>
    %cst = arith.constant dense<0.000000e+00> : vector<8x96xf32>
    %4 = tpu.matmul %2, %3, %cst {dimension_numbers = #tpu.dot_dimension_numbers<[1], [0], [0], [1], [0, 0, 1, 1], [], []>} : vector<8x32xbf16>, vector<32x96xbf16>, vector<8x96xf32> -> vector<8x96xf32>
    %c0_4 = arith.constant 0 : index
    %c0_5 = arith.constant 0 : index
    %5 = vector.load %arg4[%c0_4, %c0_5] : memref<1x96xf32, #tpu.memory_space<vmem>>, vector<1x96xf32>
    %6 = vector.broadcast %5 : vector<1x96xf32> to vector<8x96xf32>
    %7 = arith.addf %4, %6 : vector<8x96xf32>
    %8 = vector.extract_strided_slice %7 {offsets = [0, 0], sizes = [8, 32], strides = [1, 1]} : vector<8x96xf32> to vector<8x32xf32>
    %cst_6 = arith.constant 0.353553385 : f32
    %9 = vector.broadcast %cst_6 : f32 to vector<8x32xf32>
    %10 = arith.mulf %8, %9 : vector<8x32xf32>
    %11 = arith.truncf %10 : vector<8x32xf32> to vector<8x32xbf16>
    %12 = vector.extract_strided_slice %7 {offsets = [0, 32], sizes = [8, 32], strides = [1, 1]} : vector<8x96xf32> to vector<8x32xf32>
    %13 = arith.truncf %12 : vector<8x32xf32> to vector<8x32xbf16>
    %14 = vector.extract_strided_slice %7 {offsets = [0, 64], sizes = [8, 32], strides = [1, 1]} : vector<8x96xf32> to vector<8x32xf32>
    %15 = arith.truncf %14 : vector<8x32xf32> to vector<8x32xbf16>
    %c0_7 = arith.constant 0 : index
    %c0_8 = arith.constant 0 : index
    %c0_9 = arith.constant 0 : index
    %16 = vector.load %arg2[%c0_7, %c0_8, %c0_9] : memref<1x8x8xi8, #tpu.memory_space<vmem>>, vector<1x8x8xi8>
    %17 = vector.shape_cast %16 : vector<1x8x8xi8> to vector<8x8xi8>
    %18 = arith.sitofp %17 : vector<8x8xi8> to vector<8x8xf32>
    %cst_10 = arith.constant 0.000000e+00 : f32
    %19 = vector.broadcast %cst_10 : f32 to vector<8x8xf32>
    %20 = arith.cmpf one, %18, %19 : vector<8x8xf32>
    %cst_11 = arith.constant 0.000000e+00 : f32
    %cst_12 = arith.constant -1.000000e+09 : f32
    %21 = vector.broadcast %cst_11 : f32 to vector<8x8xf32>
    %22 = vector.broadcast %cst_12 : f32 to vector<8x8xf32>
    %23 = arith.select %20, %21, %22 : vector<8x8xi1>, vector<8x8xf32>
    %c0_13 = arith.constant 0 : index
    %c0_14 = arith.constant 0 : index
    %24 = vector.load %arg5[%c0_13, %c0_14] : memref<32x32xbf16, #tpu.memory_space<vmem>>, vector<32x32xbf16>
    %cst_15 = arith.constant 0.000000e+00 : f32
    %25 = vector.broadcast %cst_15 : f32 to vector<8x32xf32>
    %26 = vector.extract_strided_slice %11 {offsets = [0, 0], sizes = [8, 8], strides = [1, 1]} : vector<8x32xbf16> to vector<8x8xbf16>
    %27 = vector.extract_strided_slice %13 {offsets = [0, 0], sizes = [8, 8], strides = [1, 1]} : vector<8x32xbf16> to vector<8x8xbf16>
    %28 = vector.extract_strided_slice %15 {offsets = [0, 0], sizes = [8, 8], strides = [1, 1]} : vector<8x32xbf16> to vector<8x8xbf16>
    %cst_16 = arith.constant dense<0.000000e+00> : vector<8x8xf32>
    %29 = tpu.matmul %26, %27, %cst_16 {dimension_numbers = #tpu.dot_dimension_numbers<[1], [1], [0], [0], [0, 0, 1, 0], [], []>} : vector<8x8xbf16>, vector<8x8xbf16>, vector<8x8xf32> -> vector<8x8xf32>
    %30 = arith.addf %29, %23 : vector<8x8xf32>
    %cst_17 = arith.constant dense<0xFF800000> : vector<8xf32>
    %31 = vector.multi_reduction <maximumf>, %30, %cst_17 [1] : vector<8x8xf32> to vector<8xf32>
    %32 = vector.shape_cast %31 : vector<8xf32> to vector<8x1xf32>
    %33 = vector.broadcast %32 : vector<8x1xf32> to vector<8x8xf32>
    %34 = arith.subf %30, %33 : vector<8x8xf32>
    %35 = math.exp %34 : vector<8x8xf32>
    %cst_18 = arith.constant dense<0.000000e+00> : vector<8xf32>
    %36 = vector.multi_reduction <add>, %35, %cst_18 [1] : vector<8x8xf32> to vector<8xf32>
    %37 = vector.shape_cast %36 : vector<8xf32> to vector<8x1xf32>
    %38 = tpu.reciprocal %37 {approx = true} : vector<8x1xf32> -> vector<8x1xf32>
    %39 = vector.broadcast %38 : vector<8x1xf32> to vector<8x8xf32>
    %40 = arith.mulf %35, %39 : vector<8x8xf32>
    %41 = arith.truncf %40 : vector<8x8xf32> to vector<8x8xbf16>
    %cst_19 = arith.constant dense<0.000000e+00> : vector<8x8xf32>
    %42 = tpu.matmul %41, %28, %cst_19 {dimension_numbers = #tpu.dot_dimension_numbers<[1], [0], [0], [1], [0, 0, 1, 1], [], []>} : vector<8x8xbf16>, vector<8x8xbf16>, vector<8x8xf32> -> vector<8x8xf32>
    %43 = arith.truncf %42 : vector<8x8xf32> to vector<8x8xbf16>
    %44 = vector.extract_strided_slice %24 {offsets = [0, 0], sizes = [8, 32], strides = [1, 1]} : vector<32x32xbf16> to vector<8x32xbf16>
    %cst_20 = arith.constant dense<0.000000e+00> : vector<8x32xf32>
    %45 = tpu.matmul %43, %44, %cst_20 {dimension_numbers = #tpu.dot_dimension_numbers<[1], [0], [0], [1], [0, 0, 1, 1], [], []>} : vector<8x8xbf16>, vector<8x32xbf16>, vector<8x32xf32> -> vector<8x32xf32>
    %46 = arith.addf %25, %45 : vector<8x32xf32>
    %47 = vector.extract_strided_slice %11 {offsets = [0, 8], sizes = [8, 8], strides = [1, 1]} : vector<8x32xbf16> to vector<8x8xbf16>
    %48 = vector.extract_strided_slice %13 {offsets = [0, 8], sizes = [8, 8], strides = [1, 1]} : vector<8x32xbf16> to vector<8x8xbf16>
    %49 = vector.extract_strided_slice %15 {offsets = [0, 8], sizes = [8, 8], strides = [1, 1]} : vector<8x32xbf16> to vector<8x8xbf16>
    %cst_21 = arith.constant dense<0.000000e+00> : vector<8x8xf32>
    %50 = tpu.matmul %47, %48, %cst_21 {dimension_numbers = #tpu.dot_dimension_numbers<[1], [1], [0], [0], [0, 0, 1, 0], [], []>} : vector<8x8xbf16>, vector<8x8xbf16>, vector<8x8xf32> -> vector<8x8xf32>
    %51 = arith.addf %50, %23 : vector<8x8xf32>
    %cst_22 = arith.constant dense<0xFF800000> : vector<8xf32>
    %52 = vector.multi_reduction <maximumf>, %51, %cst_22 [1] : vector<8x8xf32> to vector<8xf32>
    %53 = vector.shape_cast %52 : vector<8xf32> to vector<8x1xf32>
    %54 = vector.broadcast %53 : vector<8x1xf32> to vector<8x8xf32>
    %55 = arith.subf %51, %54 : vector<8x8xf32>
    %56 = math.exp %55 : vector<8x8xf32>
    %cst_23 = arith.constant dense<0.000000e+00> : vector<8xf32>
    %57 = vector.multi_reduction <add>, %56, %cst_23 [1] : vector<8x8xf32> to vector<8xf32>
    %58 = vector.shape_cast %57 : vector<8xf32> to vector<8x1xf32>
    %59 = tpu.reciprocal %58 {approx = true} : vector<8x1xf32> -> vector<8x1xf32>
    %60 = vector.broadcast %59 : vector<8x1xf32> to vector<8x8xf32>
    %61 = arith.mulf %56, %60 : vector<8x8xf32>
    %62 = arith.truncf %61 : vector<8x8xf32> to vector<8x8xbf16>
    %cst_24 = arith.constant dense<0.000000e+00> : vector<8x8xf32>
    %63 = tpu.matmul %62, %49, %cst_24 {dimension_numbers = #tpu.dot_dimension_numbers<[1], [0], [0], [1], [0, 0, 1, 1], [], []>} : vector<8x8xbf16>, vector<8x8xbf16>, vector<8x8xf32> -> vector<8x8xf32>
    %64 = arith.truncf %63 : vector<8x8xf32> to vector<8x8xbf16>
    %65 = vector.extract_strided_slice %24 {offsets = [8, 0], sizes = [8, 32], strides = [1, 1]} : vector<32x32xbf16> to vector<8x32xbf16>
    %cst_25 = arith.constant dense<0.000000e+00> : vector<8x32xf32>
    %66 = tpu.matmul %64, %65, %cst_25 {dimension_numbers = #tpu.dot_dimension_numbers<[1], [0], [0], [1], [0, 0, 1, 1], [], []>} : vector<8x8xbf16>, vector<8x32xbf16>, vector<8x32xf32> -> vector<8x32xf32>
    %67 = arith.addf %46, %66 : vector<8x32xf32>
    %68 = vector.extract_strided_slice %11 {offsets = [0, 16], sizes = [8, 8], strides = [1, 1]} : vector<8x32xbf16> to vector<8x8xbf16>
    %69 = vector.extract_strided_slice %13 {offsets = [0, 16], sizes = [8, 8], strides = [1, 1]} : vector<8x32xbf16> to vector<8x8xbf16>
    %70 = vector.extract_strided_slice %15 {offsets = [0, 16], sizes = [8, 8], strides = [1, 1]} : vector<8x32xbf16> to vector<8x8xbf16>
    %cst_26 = arith.constant dense<0.000000e+00> : vector<8x8xf32>
    %71 = tpu.matmul %68, %69, %cst_26 {dimension_numbers = #tpu.dot_dimension_numbers<[1], [1], [0], [0], [0, 0, 1, 0], [], []>} : vector<8x8xbf16>, vector<8x8xbf16>, vector<8x8xf32> -> vector<8x8xf32>
    %72 = arith.addf %71, %23 : vector<8x8xf32>
    %cst_27 = arith.constant dense<0xFF800000> : vector<8xf32>
    %73 = vector.multi_reduction <maximumf>, %72, %cst_27 [1] : vector<8x8xf32> to vector<8xf32>
    %74 = vector.shape_cast %73 : vector<8xf32> to vector<8x1xf32>
    %75 = vector.broadcast %74 : vector<8x1xf32> to vector<8x8xf32>
    %76 = arith.subf %72, %75 : vector<8x8xf32>
    %77 = math.exp %76 : vector<8x8xf32>
    %cst_28 = arith.constant dense<0.000000e+00> : vector<8xf32>
    %78 = vector.multi_reduction <add>, %77, %cst_28 [1] : vector<8x8xf32> to vector<8xf32>
    %79 = vector.shape_cast %78 : vector<8xf32> to vector<8x1xf32>
    %80 = tpu.reciprocal %79 {approx = true} : vector<8x1xf32> -> vector<8x1xf32>
    %81 = vector.broadcast %80 : vector<8x1xf32> to vector<8x8xf32>
    %82 = arith.mulf %77, %81 : vector<8x8xf32>
    %83 = arith.truncf %82 : vector<8x8xf32> to vector<8x8xbf16>
    %cst_29 = arith.constant dense<0.000000e+00> : vector<8x8xf32>
    %84 = tpu.matmul %83, %70, %cst_29 {dimension_numbers = #tpu.dot_dimension_numbers<[1], [0], [0], [1], [0, 0, 1, 1], [], []>} : vector<8x8xbf16>, vector<8x8xbf16>, vector<8x8xf32> -> vector<8x8xf32>
    %85 = arith.truncf %84 : vector<8x8xf32> to vector<8x8xbf16>
    %86 = vector.extract_strided_slice %24 {offsets = [16, 0], sizes = [8, 32], strides = [1, 1]} : vector<32x32xbf16> to vector<8x32xbf16>
    %cst_30 = arith.constant dense<0.000000e+00> : vector<8x32xf32>
    %87 = tpu.matmul %85, %86, %cst_30 {dimension_numbers = #tpu.dot_dimension_numbers<[1], [0], [0], [1], [0, 0, 1, 1], [], []>} : vector<8x8xbf16>, vector<8x32xbf16>, vector<8x32xf32> -> vector<8x32xf32>
    %88 = arith.addf %67, %87 : vector<8x32xf32>
    %89 = vector.extract_strided_slice %11 {offsets = [0, 24], sizes = [8, 8], strides = [1, 1]} : vector<8x32xbf16> to vector<8x8xbf16>
    %90 = vector.extract_strided_slice %13 {offsets = [0, 24], sizes = [8, 8], strides = [1, 1]} : vector<8x32xbf16> to vector<8x8xbf16>
    %91 = vector.extract_strided_slice %15 {offsets = [0, 24], sizes = [8, 8], strides = [1, 1]} : vector<8x32xbf16> to vector<8x8xbf16>
    %cst_31 = arith.constant dense<0.000000e+00> : vector<8x8xf32>
    %92 = tpu.matmul %89, %90, %cst_31 {dimension_numbers = #tpu.dot_dimension_numbers<[1], [1], [0], [0], [0, 0, 1, 0], [], []>} : vector<8x8xbf16>, vector<8x8xbf16>, vector<8x8xf32> -> vector<8x8xf32>
    %93 = arith.addf %92, %23 : vector<8x8xf32>
    %cst_32 = arith.constant dense<0xFF800000> : vector<8xf32>
    %94 = vector.multi_reduction <maximumf>, %93, %cst_32 [1] : vector<8x8xf32> to vector<8xf32>
    %95 = vector.shape_cast %94 : vector<8xf32> to vector<8x1xf32>
    %96 = vector.broadcast %95 : vector<8x1xf32> to vector<8x8xf32>
    %97 = arith.subf %93, %96 : vector<8x8xf32>
    %98 = math.exp %97 : vector<8x8xf32>
    %cst_33 = arith.constant dense<0.000000e+00> : vector<8xf32>
    %99 = vector.multi_reduction <add>, %98, %cst_33 [1] : vector<8x8xf32> to vector<8xf32>
    %100 = vector.shape_cast %99 : vector<8xf32> to vector<8x1xf32>
    %101 = tpu.reciprocal %100 {approx = true} : vector<8x1xf32> -> vector<8x1xf32>
    %102 = vector.broadcast %101 : vector<8x1xf32> to vector<8x8xf32>
    %103 = arith.mulf %98, %102 : vector<8x8xf32>
    %104 = arith.truncf %103 : vector<8x8xf32> to vector<8x8xbf16>
    %cst_34 = arith.constant dense<0.000000e+00> : vector<8x8xf32>
    %105 = tpu.matmul %104, %91, %cst_34 {dimension_numbers = #tpu.dot_dimension_numbers<[1], [0], [0], [1], [0, 0, 1, 1], [], []>} : vector<8x8xbf16>, vector<8x8xbf16>, vector<8x8xf32> -> vector<8x8xf32>
    %106 = arith.truncf %105 : vector<8x8xf32> to vector<8x8xbf16>
    %107 = vector.extract_strided_slice %24 {offsets = [24, 0], sizes = [8, 32], strides = [1, 1]} : vector<32x32xbf16> to vector<8x32xbf16>
    %cst_35 = arith.constant dense<0.000000e+00> : vector<8x32xf32>
    %108 = tpu.matmul %106, %107, %cst_35 {dimension_numbers = #tpu.dot_dimension_numbers<[1], [0], [0], [1], [0, 0, 1, 1], [], []>} : vector<8x8xbf16>, vector<8x32xbf16>, vector<8x32xf32> -> vector<8x32xf32>
    %109 = arith.addf %88, %108 : vector<8x32xf32>
    %c0_36 = arith.constant 0 : index
    %c0_37 = arith.constant 0 : index
    %110 = vector.load %arg7[%c0_36, %c0_37] : memref<7x32xf32, #tpu.memory_space<vmem>>, vector<1x32xf32>
    %c1 = arith.constant 1 : index
    %c0_38 = arith.constant 0 : index
    %111 = vector.load %arg7[%c1, %c0_38] : memref<7x32xf32, #tpu.memory_space<vmem>>, vector<1x32xf32>
    %c2 = arith.constant 2 : index
    %c0_39 = arith.constant 0 : index
    %112 = vector.load %arg7[%c2, %c0_39] : memref<7x32xf32, #tpu.memory_space<vmem>>, vector<1x32xf32>
    %c3 = arith.constant 3 : index
    %c0_40 = arith.constant 0 : index
    %113 = vector.load %arg7[%c3, %c0_40] : memref<7x32xf32, #tpu.memory_space<vmem>>, vector<1x32xf32>
    %c4 = arith.constant 4 : index
    %c0_41 = arith.constant 0 : index
    %114 = vector.load %arg7[%c4, %c0_41] : memref<7x32xf32, #tpu.memory_space<vmem>>, vector<1x32xf32>
    %c5 = arith.constant 5 : index
    %c0_42 = arith.constant 0 : index
    %115 = vector.load %arg7[%c5, %c0_42] : memref<7x32xf32, #tpu.memory_space<vmem>>, vector<1x32xf32>
    %c6 = arith.constant 6 : index
    %c0_43 = arith.constant 0 : index
    %116 = vector.load %arg7[%c6, %c0_43] : memref<7x32xf32, #tpu.memory_space<vmem>>, vector<1x32xf32>
    %117 = vector.broadcast %110 : vector<1x32xf32> to vector<8x32xf32>
    %118 = arith.addf %109, %117 : vector<8x32xf32>
    %119 = arith.addf %118, %1 : vector<8x32xf32>
    %cst_44 = arith.constant dense<0.000000e+00> : vector<8xf32>
    %120 = vector.multi_reduction <add>, %119, %cst_44 [1] : vector<8x32xf32> to vector<8xf32>
    %121 = vector.shape_cast %120 : vector<8xf32> to vector<8x1xf32>
    %cst_45 = arith.constant 3.200000e+01 : f32
    %122 = vector.broadcast %cst_45 : f32 to vector<8x1xf32>
    %123 = arith.divf %121, %122 : vector<8x1xf32>
    %124 = vector.broadcast %123 : vector<8x1xf32> to vector<8x32xf32>
    %125 = arith.subf %119, %124 : vector<8x32xf32>
    %126 = arith.mulf %125, %125 : vector<8x32xf32>
    %cst_46 = arith.constant dense<0.000000e+00> : vector<8xf32>
    %127 = vector.multi_reduction <add>, %126, %cst_46 [1] : vector<8x32xf32> to vector<8xf32>
    %128 = vector.shape_cast %127 : vector<8xf32> to vector<8x1xf32>
    %cst_47 = arith.constant 3.200000e+01 : f32
    %129 = vector.broadcast %cst_47 : f32 to vector<8x1xf32>
    %130 = arith.divf %128, %129 : vector<8x1xf32>
    %131 = vector.broadcast %123 : vector<8x1xf32> to vector<8x32xf32>
    %132 = arith.subf %119, %131 : vector<8x32xf32>
    %cst_48 = arith.constant 9.99999974E-6 : f32
    %133 = vector.broadcast %cst_48 : f32 to vector<8x1xf32>
    %134 = arith.addf %130, %133 : vector<8x1xf32>
    %135 = math.rsqrt %134 : vector<8x1xf32>
    %136 = vector.broadcast %135 : vector<8x1xf32> to vector<8x32xf32>
    %137 = arith.mulf %132, %136 : vector<8x32xf32>
    %138 = vector.broadcast %111 : vector<1x32xf32> to vector<8x32xf32>
    %139 = arith.mulf %137, %138 : vector<8x32xf32>
    %140 = vector.broadcast %112 : vector<1x32xf32> to vector<8x32xf32>
    %141 = arith.addf %139, %140 : vector<8x32xf32>
    %142 = arith.truncf %141 : vector<8x32xf32> to vector<8x32xbf16>
    %c0_49 = arith.constant 0 : index
    %c0_50 = arith.constant 0 : index
    %c0_51 = arith.constant 0 : index
    %143 = vector.load %arg6[%c0_49, %c0_50, %c0_51] : memref<2x32x32xbf16, #tpu.memory_space<vmem>>, vector<1x32x32xbf16>
    %144 = vector.shape_cast %143 : vector<1x32x32xbf16> to vector<32x32xbf16>
    %cst_52 = arith.constant dense<0.000000e+00> : vector<8x32xf32>
    %145 = tpu.matmul %142, %144, %cst_52 {dimension_numbers = #tpu.dot_dimension_numbers<[1], [0], [0], [1], [0, 0, 1, 1], [], []>} : vector<8x32xbf16>, vector<32x32xbf16>, vector<8x32xf32> -> vector<8x32xf32>
    %146 = vector.broadcast %113 : vector<1x32xf32> to vector<8x32xf32>
    %147 = arith.addf %145, %146 : vector<8x32xf32>
    %cst_53 = arith.constant 0.000000e+00 : f32
    %148 = vector.broadcast %cst_53 : f32 to vector<8x32xf32>
    %149 = arith.maximumf %147, %148 : vector<8x32xf32>
    %150 = arith.truncf %149 : vector<8x32xf32> to vector<8x32xbf16>
    %c1_54 = arith.constant 1 : index
    %c0_55 = arith.constant 0 : index
    %c0_56 = arith.constant 0 : index
    %151 = vector.load %arg6[%c1_54, %c0_55, %c0_56] : memref<2x32x32xbf16, #tpu.memory_space<vmem>>, vector<1x32x32xbf16>
    %152 = vector.shape_cast %151 : vector<1x32x32xbf16> to vector<32x32xbf16>
    %cst_57 = arith.constant dense<0.000000e+00> : vector<8x32xf32>
    %153 = tpu.matmul %150, %152, %cst_57 {dimension_numbers = #tpu.dot_dimension_numbers<[1], [0], [0], [1], [0, 0, 1, 1], [], []>} : vector<8x32xbf16>, vector<32x32xbf16>, vector<8x32xf32> -> vector<8x32xf32>
    %154 = vector.broadcast %114 : vector<1x32xf32> to vector<8x32xf32>
    %155 = arith.addf %153, %154 : vector<8x32xf32>
    %156 = arith.addf %155, %141 : vector<8x32xf32>
    %cst_58 = arith.constant dense<0.000000e+00> : vector<8xf32>
    %157 = vector.multi_reduction <add>, %156, %cst_58 [1] : vector<8x32xf32> to vector<8xf32>
    %158 = vector.shape_cast %157 : vector<8xf32> to vector<8x1xf32>
    %cst_59 = arith.constant 3.200000e+01 : f32
    %159 = vector.broadcast %cst_59 : f32 to vector<8x1xf32>
    %160 = arith.divf %158, %159 : vector<8x1xf32>
    %161 = vector.broadcast %160 : vector<8x1xf32> to vector<8x32xf32>
    %162 = arith.subf %156, %161 : vector<8x32xf32>
    %163 = arith.mulf %162, %162 : vector<8x32xf32>
    %cst_60 = arith.constant dense<0.000000e+00> : vector<8xf32>
    %164 = vector.multi_reduction <add>, %163, %cst_60 [1] : vector<8x32xf32> to vector<8xf32>
    %165 = vector.shape_cast %164 : vector<8xf32> to vector<8x1xf32>
    %cst_61 = arith.constant 3.200000e+01 : f32
    %166 = vector.broadcast %cst_61 : f32 to vector<8x1xf32>
    %167 = arith.divf %165, %166 : vector<8x1xf32>
    %168 = vector.broadcast %160 : vector<8x1xf32> to vector<8x32xf32>
    %169 = arith.subf %156, %168 : vector<8x32xf32>
    %cst_62 = arith.constant 9.99999974E-6 : f32
    %170 = vector.broadcast %cst_62 : f32 to vector<8x1xf32>
    %171 = arith.addf %167, %170 : vector<8x1xf32>
    %172 = math.rsqrt %171 : vector<8x1xf32>
    %173 = vector.broadcast %172 : vector<8x1xf32> to vector<8x32xf32>
    %174 = arith.mulf %169, %173 : vector<8x32xf32>
    %175 = vector.broadcast %115 : vector<1x32xf32> to vector<8x32xf32>
    %176 = arith.mulf %174, %175 : vector<8x32xf32>
    %177 = vector.broadcast %116 : vector<1x32xf32> to vector<8x32xf32>
    %178 = arith.addf %176, %177 : vector<8x32xf32>
    %c0_63 = arith.constant 0 : index
    %c0_64 = arith.constant 0 : index
    %c0_65 = arith.constant 0 : index
    %179 = vector.load %arg8[%c0_63, %c0_64, %c0_65] : memref<1x8x32xf32, #tpu.memory_space<vmem>>, vector<1x8x32xf32>
    %180 = vector.shape_cast %179 : vector<1x8x32xf32> to vector<8x32xf32>
    %181 = vector.shape_cast %178 : vector<8x32xf32> to vector<1x8x32xf32>
    tpu.vector_store %arg8[%c0_63, %c0_64, %c0_65], %181 {strides = array<i32>} : memref<1x8x32xf32, #tpu.memory_space<vmem>>, vector<1x8x32xf32>,
    return
  }
  func.func @transform_0(%arg0: i32) -> (i32, i32, i32) {
    %c0_i32 = arith.constant 0 : i32
    %c0_i32_0 = arith.constant 0 : i32
    %c0_i32_1 = arith.constant 0 : i32
    return %arg0, %c0_i32, %c0_i32_0 : i32, i32, i32
  }
  func.func @transform_1(%arg0: i32) -> (i32, i32, i32) {
    %c0_i32 = arith.constant 0 : i32
    %c0_i32_0 = arith.constant 0 : i32
    %c0_i32_1 = arith.constant 0 : i32
    return %arg0, %c0_i32, %c0_i32_0 : i32, i32, i32
  }
  func.func @transform_2(%arg0: i32) -> (i32, i32) {
    %c0_i32 = arith.constant 0 : i32
    %c0_i32_0 = arith.constant 0 : i32
    %c0_i32_1 = arith.constant 0 : i32
    return %c0_i32, %c0_i32_0 : i32, i32
  }
  func.func @transform_3(%arg0: i32) -> (i32, i32) {
    %c0_i32 = arith.constant 0 : i32
    %c0_i32_0 = arith.constant 0 : i32
    %c0_i32_1 = arith.constant 0 : i32
    return %c0_i32, %c0_i32_0 : i32, i32
  }
  func.func @transform_4(%arg0: i32) -> (i32, i32) {
    %c0_i32 = arith.constant 0 : i32
    %c0_i32_0 = arith.constant 0 : i32
    %c0_i32_1 = arith.constant 0 : i32
    return %c0_i32, %c0_i32_0 : i32, i32
  }
  func.func @transform_5(%arg0: i32) -> (i32, i32, i32) {
    %c0_i32 = arith.constant 0 : i32
    %c0_i32_0 = arith.constant 0 : i32
    %c0_i32_1 = arith.constant 0 : i32
    %c0_i32_2 = arith.constant 0 : i32
    return %c0_i32, %c0_i32_0, %c0_i32_1 : i32, i32, i32
  }
  func.func @transform_6(%arg0: i32) -> (i32, i32) {
    %c0_i32 = arith.constant 0 : i32
    %c0_i32_0 = arith.constant 0 : i32
    %c0_i32_1 = arith.constant 0 : i32
    return %c0_i32, %c0_i32_0 : i32, i32
  }
  func.func @transform_7(%arg0: i32) -> (i32, i32, i32) {
    %c0_i32 = arith.constant 0 : i32
    %c0_i32_0 = arith.constant 0 : i32
    %c0_i32_1 = arith.constant 0 : i32
    return %arg0, %c0_i32, %c0_i32_0 : i32, i32, i32
  }
}

</mosaic_0001>

<bundles_post_ra>
// kernel: tpu_custom_call.1
= control target key start
LH: loop header
LB: loop body
LE: loop exit
PB: predicated region body
PF: predicated region fallthrough
CT: control target
= control target key end

     0   :  { %s2362_s0 = inlined_call_operand.hbm [shape: f32[2,8,32], index: 0, kind: input, shape index: {}]   ;;  %s2363_s1 = inlined_call_operand.hbm [shape: s8[2,8,8], index: 1, kind: input, shape index: {}]   ;;  %s2364_s2 = inlined_call_operand.hbm [shape: bf16[32,96], index: 2, kind: input, shape index: {}]   ;;  %s2365_s3 = inlined_call_operand.vmem [shape: f32[1,96], index: 3, kind: input, shape index: {}]   ;;  %s2366_s4 = inlined_call_operand.hbm [shape: bf16[32,32], index: 4, kind: input, shape index: {}]   ;;  %s2367_s5 = inlined_call_operand.hbm [shape: bf16[2,32,32], index: 5, kind: input, shape index: {}]   ;;  %s2368_s6 = inlined_call_operand.vmem [shape: f32[7,32], index: 6, kind: input, shape index: {}]   ;;  %s2369_s7 = inlined_call_operand.hbm [shape: f32[2,8,32], index: 7, kind: output, shape index: {}]  }
   0x1   :  { %2374 = sst [smem:[#allocation17_spill]] %s2362_s0 }
   0x2   :  { %2375 = sst [smem:[#allocation18_spill]] %s2364_s2 }
   0x3   :  { %2376 = sst [smem:[#allocation19_spill]] %s2366_s4 }
   0x4   :  { %12 = vsyncpa [#allocation3], 0 }
   0x5   :  { %14 = vsyncpa [#allocation3 + $0x1], 0 }
   0x6   :  { %15 = vsyncpa [#allocation6], 0 }
   0x7   :  { %17 = vsyncpa [#allocation6 + $0x1], 0 }
   0x8   :  { %18 = vsyncpa [#allocation9], 0 }
   0x9   :  { %19 = vsyncpa [#allocation4], 0 }
   0xa   :  { %21 = vsyncpa [#allocation4 + $0x1], 0  ;;  %s1992_s24 = smov 0   ;;  %s1994_s25 = smov 0  }
   0xb   :  { %s1996_s26 = smov 0   ;;  %s1998_s27 = smov 0  }
   0xc LB: > { %s2013_s28 = sadd.s32 4294967295, %s1928_s27   ;;  %s1415_s29 = sadd.s32 4294967294, %s1928_s27   ;;  %s1928_s27 = sphi %s1998_s27, %s2400_s27   ;;  %s1924_s26 = sphi %s1996_s26, %s2399_s26   ;;  %s1920_s25 = sphi %s1994_s25, %s2398_s25   ;;  %s1916_s24 = sphi %s1992_s24, %s2397_s24  }
   0xd   : > { %p47_p0 = scmp.ne.s32.totalorder %s1920_s25, %s1916_s24  ;;  %p2370_p1 = scmp.eq.s32.totalorder %s2013_s28, 0 }
   0xe   : > { %p208_p3 = scmp.eq.s32.totalorder %s1415_s29, 1  ;;  %p1416_p5 = scmp.ge.s32.totalorder %s1928_s27, 1 }
   0xf   : > { %p2022_p4 = por %p2370_p1, %p47_p0  ;;  %p215_p7 = scmp.lt.s32.totalorder %s1928_s27, 3 }
  0x10   : > { %p2027_p6 = por %p208_p3, %p47_p0  ;;  %s1930_s10 = smov [#allocation7]  }
  0x11   : > { %s2377_s30 = scalar_select %p2022_p4, 1, 0 }
  0x12   : > { %s2378_s8 = scalar_select %p2027_p6, 1, 0 }
  0x13   : > { %p2032_p8 = pnand %p1416_p5, %p215_p7  ;;  %s227_s11 = sshll.u32 %s1930_s10, 4  ;;  %s228_s11 = int_to_ptr.vmem [resolvable:$true] %s227_s11 }
  0x14   : > { %s1931_s13 = smov [#allocation8]   ;;  %s1932_s15 = smov [#allocation10]  }
  0x15   : > { %s2379_s9 = scalar_select %p2032_p8, 1, 0 }
  0x16   : > { %p1612_p9 = pneg %p2032_p8  ;;  %s243_s14 = sshll.u32 %s1931_s13, 4  ;;  %s244_s14 = int_to_ptr.vmem [resolvable:$true] %s243_s14 }
  0x17   : > { %s256_s16 = sshll.u32 %s1932_s15, 4  ;;  %s1729_s17 = scalar_lea.vmem %s228_s11, 256  ;;  %s257_s16 = int_to_ptr.vmem [resolvable:$true] %s256_s16 }
  0x18   : > { %p2041_p11 = pnand %p1612_p9, %p2370_p1  ;;  %p1730_p13 = scmp.ne.s32.totalorder %s228_s11, %s1729_s17 }
  0x19   : > { %p1737_p5 = scmp.lt.s32.totalorder %s228_s11, %s228_s11  ;;  %p1738_p7 = scmp.lt.s32.totalorder %s1729_s17, %s1729_s17 }
  0x1a   : > { %p1720_p12 = pneg %p2041_p11 }
  0x1b   : > { %p1739_p9 = por %p1738_p7, %p1737_p5 }
  0x1c   : > { %p1732_p0 = pnand %p1730_p13, %p1720_p12 }
  0x1e   : > { %p1733_p3 = pneg %p1732_p0 }
  0x20   : > { %p1740_p10 = pnand %p1739_p9, %p1733_p3 }
  0x22   : > { %1743 = shalt.err (!%p1740_p10)
}
  0x23   : > { %s1933_s18 = smov 64   ;;  %s1934_s19 = smov 4  }
  0x24   : > { %s2381_s2 = sld [smem:[#allocation18_spill]]  ;;  %s1755_s22 = scalar_lea.vmem %s244_s14, 256 }
  0x25   : > { %p1756_p1 = scmp.ne.s32.totalorder %s244_s14, %s1755_s22  ;;  %p1763_p2 = scmp.lt.s32.totalorder %s244_s14, %s244_s14 }
  0x26   : > { %p1764_p6 = scmp.lt.s32.totalorder %s1755_s22, %s1755_s22 }
  0x27   : > { %p1758_p13 = pnand %p1756_p1, %p1720_p12 }
  0x28   : > { %p1765_p5 = por %p1764_p6, %p1763_p2 }
  0x29   : > { %p1759_p0 = pneg %p1758_p13 }
  0x2a   : > { %1615 = dma.hbm_to_vmem [thread:$0]  (!%p2041_p11), %s2381_s2, 256, %s228_s11, [#allocation6], %s1933_s18, %s1933_s18, %s1934_s19  }
  0x2b   : > { %p1766_p3 = pnand %p1765_p5, %p1759_p0 }
  0x2d   : > { %1769 = shalt.err (!%p1766_p3)
}
  0x2e   : > { %s2382_s4 = sld [smem:[#allocation19_spill]]  ;;  %s1781_s10 = scalar_lea.vmem %s257_s16, 512 }
  0x2f   : > { %p1782_p10 = scmp.ne.s32.totalorder %s257_s16, %s1781_s10  ;;  %p1789_p9 = scmp.lt.s32.totalorder %s257_s16, %s257_s16 }
  0x30   : > { %p1790_p13 = scmp.lt.s32.totalorder %s1781_s10, %s1781_s10 }
  0x31   : > { %p1784_p7 = pnand %p1782_p10, %p1720_p12 }
  0x32   : > { %p1791_p4 = por %p1790_p13, %p1789_p9 }
  0x33   : > { %p1785_p1 = pneg %p1784_p7 }
  0x34   : > { %1618 = dma.hbm_to_vmem [thread:$0]  (!%p2041_p11), %s2382_s4, 256, %s244_s14, [#allocation9], %s1933_s18, %s1933_s18, %s1934_s19  }
  0x35   : > { %p1792_p2 = pnand %p1791_p4, %p1785_p1 }
  0x37   : > { %1795 = shalt.err (!%p1792_p2)
}
  0x38   : > { %1621 = dma.hbm_to_vmem [thread:$0]  (!%p2041_p11), %s2367_s5, 512, %s257_s16, [#allocation9], %s1933_s18, %s1933_s18, %s1934_s19  }
  0x39   : > { %s2072_s14 = sadd.s32 1, %s1928_s27   ;;  %s34_s12 = sadd.s32 1, %s1924_s26 }
  0x3a   : > { %s31_s15 = ssub.s32 %s1928_s27, %s2072_s14  ;;  %p41_p6 = scmp.ne.s32.totalorder %s1924_s26, %s1920_s25 }
  0x3b   : > { %p32_p4 = scmp.eq.s32.totalorder %s31_s15, 0  ;;  %p42_p12 = scmp.eq.s32.totalorder %s1928_s27, 0 }
  0x3c   : > { %p1636_p0 = scmp.lt.s32.totalorder %s1928_s27, 2  ;;  %p2383_p3 = scmp.eq.s32.totalorder %s2013_s28, 1 }
  0x3d   : > { %s2082_s17 = scalar_select %p32_p4, %s1924_s26, %s34_s12  }
  0x3e   : > { %p43_p5 = por %p42_p12, %p41_p6  ;;  %p2086_p10 = por %p2383_p3, %p41_p6 }
  0x3f   : > { %s2091_s21 = sand.u32 1, %s1924_s26   ;;  %s1422_s16 = sshll.u32 %s1928_s27, 7 }
  0x40   : > { %s2384_s20 = scalar_select %p2086_p10, 1, 0 }
  0x41   : > { %s1421_s18 = sshll.u32 %s2091_s21, 3  ;;  %s2385_s0 = sld [smem:[#allocation17_spill]] }
  0x42   : > { %s277_s29 = scalar_lea.vmem [#allocation2], %s1421_s18  ;;  %p2100_p11 = pnand %p1636_p0, %p43_p5 }
  0x43   : > { %s284_s10 = sshll.u32 %s277_s29, 4  ;;  %s274_s15 = scalar_lea.sflag [#allocation3], %s2091_s21  ;;  %s285_s10 = int_to_ptr.vmem [resolvable:$true] %s284_s10 }
  0x44   : > { %p1798_p1 = pneg %p2100_p11 }
  0x47   : > { %s2098_s23 = scalar_lea.hbm %s2385_s0, %s1422_s16  ;;  %s1801_s19 = scalar_lea.hbm %s2385_s0, 256 }
  0x48   : > { %s1796_s12 = scalar_lea.hbm %s2098_s23, 128  ;;  %p1802_p2 = scmp.lt.s32.totalorder %s2098_s23, %s2385_s0 }
  0x49   : > { %p1797_p7 = scmp.ne.s32.totalorder %s2098_s23, %s1796_s12  ;;  %p1803_p4 = scmp.lt.s32.totalorder %s1801_s19, %s1796_s12 }
  0x4b   : > { %p1799_p9 = pnand %p1798_p1, %p1797_p7  ;;  %p1804_p6 = por %p1803_p4, %p1802_p2 }
  0x4d   : > { %p1800_p13 = pneg %p1799_p9 }
  0x4f   : > { %p1805_p12 = pnand %p1804_p6, %p1800_p13 }
  0x51   : > { %1808 = shalt.err (!%p1805_p12)
}
  0x52   : > { %s1809_s13 = scalar_lea.vmem %s285_s10, 128  ;;  %s1935_s2 = smov [#allocation2]  }
  0x53   : > { %p1810_p0 = scmp.ne.s32.totalorder %s285_s10, %s1809_s13  ;;  %s1814_s4 = sshll.u32 %s1935_s2, 4  ;;  %s1815_s4 = int_to_ptr.vmem [resolvable:$false] %s1814_s4 }
  0x54   : > { %s1816_s16 = scalar_lea.vmem %s1815_s4, 256  ;;  %p1817_p7 = scmp.lt.s32.totalorder %s285_s10, %s1815_s4 }
  0x55   : > { %p1812_p5 = pnand %p1810_p0, %p1798_p1  ;;  %p1818_p9 = scmp.lt.s32.totalorder %s1816_s16, %s1809_s13 }
  0x57   : > { %p1813_p3 = pneg %p1812_p5  ;;  %p1819_p10 = por %p1818_p9, %p1817_p7 }
  0x59   : > { %p1820_p8 = pnand %p1819_p10, %p1813_p3 }
  0x5b   : > { %1823 = shalt.err (!%p1820_p8)
}
  0x5c   : > { %1625 = dma.hbm_to_vmem [thread:$0]  (!%p2100_p11), %s2098_s23, 128, %s285_s10, %s274_s15  }
  0x5d   : > { %s1423_s12 = sshll.u32 %s2091_s21, 1  ;;  %s1424_s18 = sshll.u32 %s1928_s27, 5 }
  0x5e   : > { %s2131_s2 = scalar_lea.hbm %s2363_s1, %s1424_s18  ;;  %s295_s4 = scalar_lea.vmem [#allocation5], %s1423_s12 }
  0x5f   : > { %s302_s13 = sshll.u32 %s295_s4, 4  ;;  %s2387_s29 = sand.u32 1, %s1928_s27   ;;  %s303_s13 = int_to_ptr.vmem [resolvable:$true] %s302_s13 }
  0x60   : > { %s292_s16 = scalar_lea.sflag [#allocation6], %s2387_s29  ;;  %s1824_s0 = scalar_lea.hbm %s2131_s2, 32 }
  0x61   : > { %p1825_p8 = scmp.ne.s32.totalorder %s2131_s2, %s1824_s0  ;;  %s1829_s10 = scalar_lea.hbm %s2363_s1, 64 }
  0x62   : > { %p1830_p2 = scmp.lt.s32.totalorder %s2131_s2, %s2363_s1  ;;  %p1831_p4 = scmp.lt.s32.totalorder %s1829_s10, %s1824_s0 }
  0x63   : > { %p1827_p10 = pnand %p1825_p8, %p1798_p1 }
  0x64   : > { %p1832_p6 = por %p1831_p4, %p1830_p2 }
  0x65   : > { %p1828_p13 = pneg %p1827_p10 }
  0x67   : > { %p1833_p12 = pnand %p1832_p6, %p1828_p13 }
  0x69   : > { %1836 = shalt.err (!%p1833_p12)
}
  0x6a   : > { %s1837_s12 = scalar_lea.vmem %s303_s13, 32  ;;  %s1936_s19 = smov [#allocation5]  }
  0x6b   : > { %p1838_p0 = scmp.ne.s32.totalorder %s303_s13, %s1837_s12  ;;  %s1842_s22 = sshll.u32 %s1936_s19, 4  ;;  %s1843_s22 = int_to_ptr.vmem [resolvable:$false] %s1842_s22 }
  0x6c   : > { %s1844_s4 = scalar_lea.vmem %s1843_s22, 64  ;;  %p1845_p7 = scmp.lt.s32.totalorder %s303_s13, %s1843_s22 }
  0x6d   : > { %p1840_p5 = pnand %p1838_p0, %p1798_p1  ;;  %p1846_p9 = scmp.lt.s32.totalorder %s1844_s4, %s1837_s12 }
  0x6f   : > { %p1841_p3 = pneg %p1840_p5  ;;  %p1847_p8 = por %p1846_p9, %p1845_p7 }
  0x71   : > { %p1848_p10 = pnand %p1847_p8, %p1841_p3 }
  0x73   : > { %1851 = shalt.err (!%p1848_p10)
}
  0x74   : > { %1628 = dma.hbm_to_vmem [thread:$0]  (!%p2100_p11), %s2131_s2, 32, %s303_s13, %s292_s16  }
  0x75   : > { %p2388_p13 = scmp.ne.s32.totalorder %s2379_s9, 0 }
  0x76   : > { %s2156_s0 = sand.u32 (!%p2388_p13), 1, %s1920_s25   ;;  %p2389_p1 = scmp.ne.s32.totalorder (!%p2388_p13), %s2377_s30, 0 }
  0x77   : > { %311 = sbr.rel (%p2388_p13) target bundleno = 3632 (0xe30), region = 48  ;;  %s1426_s29 = sshll.u32 (!%p2388_p13), %s2156_s0, 3 }
  0x78   : > { %s314_s21 = scalar_lea.sflag (!%p2388_p13), [#allocation3], %s2156_s0  ;;  %s317_s23 = scalar_lea.vmem (!%p2388_p13), [#allocation2], %s1426_s29 }
  0x7c   : > { %1895 = dma.done.wait (%p2389_p1), %s314_s21, 128  }
  0x7d   : > { %1897 = vsyncadd (%p2389_p1), %s314_s21, 4294967168  ;;  %s322_s9 = sand.u32 1, %s2013_s28   ;;  %s1427_s11 = sshll.u32 %s2156_s0, 1 }
  0x7e   : > { %s323_s2 = scalar_lea.sflag [#allocation6], %s322_s9  ;;  %s2168_s13 = scalar_lea.vmem [#allocation5], %s1427_s11 }
  0x7f   : > { %1899 = dma.done.wait (%p2389_p1), %s323_s2, 32  }
  0x80   : > { %1901 = vsyncadd (%p2389_p1), %s323_s2, 4294967264  ;;  %p2390_p11 = scmp.eq.s32.totalorder %s2013_s28, 0 }
  0x82   : > { %1903 = dma.done.wait (%p2390_p11), [#allocation6], 256   ;;  %p2391_p2 = pmov %p2390_p11 }
  0x84   : > { %1905 = vsyncadd (%p2391_p2), [#allocation6], 4294967040  ;;  %p2392_p4 = pmov %p2391_p2 }
  0x85   : > { %p2393_p6 = pmov %p2391_p2 }
  0x86   : > { %1907 = dma.done.wait (%p2392_p4), [#allocation9], 768  }
  0x87   : > { %1909 = vsyncadd (%p2393_p6), [#allocation9], 4294966528  ;;  %v1937_v0 = vmov 0.0   ;;  %vm1938_vm0 = vmmov 0   ;;  %v1692_v1 = vld [vmem:[#allocation7 + $0x8] sm:$0xff]   ;;  %v1693_v2 = vld [vmem:[#allocation7] sm:$0xff]  }
  0x88   : > { %1498 = vmatprep.subr.bf16.mxu0 %v1937_v0  ;;  %1502 = vmatprep.mubr.msk.bf16.mxu0 %vm1938_vm0, %v1937_v0  ;;  %v2188_v3 = vld [vmem:[%s317_s23] sm:$0xff]  ;;  %vm400_vm1 = vcmask 261120   ;;  %s1939_s10 = smov 96   ;;  %s1940_s15 = smov 120   ;;  %vm459_vm2 = vcmask 64512   ;;  %vm523_vm4 = vcmask 1043456  }
  0x89   : > { %1506 = vmatprep.subr.bf16.mxu1 %v1937_v0  ;;  %1508 = vmatprep.mubr.msk.bf16.mxu1 %vm1938_vm0, %v1937_v0  ;;  %v376_v4 = vpack.c.bf16 %v2188_v3, %v2188_v3  ;;  %v1432_v5 = vld [vmem:[%s2365_s3] ss:$0 sm:$0xff]  ;;  %s1941_s18 = smov 88   ;;  %v447_v19 = vld [vmem:[%s2168_s13] sm:$0x3]  ;;  %s1943_s12 = smov 64  }
  0x8a   : > { %1499 = vmatpush3.bf16.msra.mxu0 %v1692_v1  ;;  %v448_v20 = vunpack.c.0.s8 %v447_v19  ;;  %v1942_v22 = vmov -1e+09   ;;  %s1944_s19 = smov 56   ;;  %s1945_s22 = smov 112   ;;  %v452_v58 = vld [vmem:[#allocation8] sm:$0xf] }
  0x8b   : > { %1500 = vmatprep.subr.bf16.mxu0 %v1937_v0  ;;  %s1946_s4 = smov 80   ;;  %v730_v59 = vsel %vm523_vm4, %v452_v58, 0  ;;  %v453_v60 = vld [vmem:[#allocation8 + $0x4] sm:$0xf]  ;;  %s1947_s21 = smov 72  }
  0x8c   : > { %v449_v21 = vcvt.s32.f32 %v448_v20  ;;  %v684_v61 = vsel %vm523_vm4, %v453_v60, 0  ;;  %s1948_s23 = smov 104   ;;  %s1949_s9 = smov 48  }
  0x8d   : > { %s1950_s11 = smov 40   ;;  %s373_s2 = scalar_lea.vmem [#allocation11], %s1426_s29 }
  0x8e   : > { %1501 = vmatpush3.bf16.msra.mxu0 %v1693_v2  ;;  %vm450_vm3 = vcmp.ne.f32.partialorder %v449_v21, 0.0  ;;  %s1294_s13 = sshll.u32 %s373_s2, 4  ;;  %p2394_p0 = scmp.ne.s32.totalorder %s2384_s20, 0  ;;  %s1295_s13 = int_to_ptr.vmem [resolvable:$true] %s1294_s13 }
  0x8f   : > { %1512 = vmatprep.subr.bf16.mxu0 %v1937_v0  ;;  %v2219_v23 = vsel %vm450_vm3, 0.0, %v1942_v22 }
  0x91   : > { %1503 = vmatmul.mubr.msk.bf16.vlgmr.msra.gmra.mxu0 %vm400_vm1, %v376_v4 }
  0x92   : > { %1514 = vmatprep.mubr.msk.bf16.mxu0 %vm1938_vm0, %v1937_v0 }
 0x151   : > { %v438_v6 = vpop.f32.mrf.mxu0 }
 0x152   : > { %v439_v7 = vadd.f32 %v1432_v5, %v438_v6 }
 0x153   : > { %v1504_v8 = vpop.f32.mrf.mxu0 }
 0x154   : > { %v444_v9 = vmul.f32 0.35355338, %v439_v7  ;;  %v2200_v10 = vpack.c.bf16 %v439_v7, %v439_v7 }
 0x155   : > { %v441_v11 = vpop.f32.mrf.mxu0 }
 0x156   : > { %v2202_v12 = vpack.c.bf16 %v444_v9, %v444_v9  ;;  %457 = vrot.lane.b32.xlu0 %v2200_v10, %s1939_s10 }
 0x157   : > { %v1505_v13 = vpop.f32.mrf.mxu0 }
 0x158   : > { %569 = vrot.lane.b32.xlu1 %v2202_v12, %s1940_s15  ;;  %s1281_s15 = scalar_lea.sflag [#allocation4], %s2156_s0 }
 0x15a   : > { %571 = vrot.lane.b32.xlu0 %v2200_v10, %s1941_s18  ;;  %s1852_s18 = scalar_lea.vmem %s1295_s13, 128 }
 0x15b   : > { %p1853_p12 = scmp.ne.s32.totalorder %s1295_s13, %s1852_s18 }
 0x15d   : > { %p1854_p5 = pnand %p1853_p12, %p2394_p0 }
 0x15f   : > { %p1855_p3 = pneg %p1854_p5 }
 0x1c8   : > { %v458_v14 = vpop.permute.xlu0 %457 }
 0x1c9   : > { %v464_v15 = vsel %vm459_vm2, %v458_v14, 0 }
 0x1ca   : > { %1507 = vmatpush3.bf16.xpose.msra.mxu1 %v464_v15  ;;  %v570_v18 = vpop.permute.xlu1 %569 }
 0x1cb   : > { %1518 = vmatprep.subr.bf16.mxu1 %v1937_v0 }
 0x1cc   : > { %v572_v16 = vpop.permute.xlu0 %571 }
 0x1cd   : > { %v577_v17 = vsel %vm459_vm2, %v572_v16, 0 }
 0x1d1   : > { %1509 = vmatmul.mubr.msk.bf16.vlgmr.msra.gmra.mxu1 %vm459_vm2, %v2202_v12 }
 0x1d2   : > { %1519 = vmatpush3.bf16.xpose.msra.mxu1 %v577_v17  ;;  %1520 = vmatprep.mubr.msk.bf16.mxu1 %vm1938_vm0, %v1937_v0 }
 0x1d3   : > { %1530 = vmatprep.subr.bf16.mxu1 %v1937_v0 }
 0x1d9   : > { %1521 = vmatmul.mubr.msk.bf16.vlgmr.msra.gmra.mxu1 %vm459_vm2, %v570_v18 }
 0x1da   : > { %1532 = vmatprep.mubr.msk.bf16.mxu1 %vm1938_vm0, %v1937_v0  ;;  %1531 = vmatpush3.bf16.msra.mxu1 %v684_v61 }
 0x1db   : > { %1542 = vmatprep.subr.bf16.mxu1 %v1937_v0 }
 0x291   : > { %v500_v24 = vpop.f32.mrf.mxu1 }
 0x292   : > { %v501_v25 = vadd.f32 %v500_v24, %v2219_v23 }
 0x293   : > { %v1510_v26 = vpop.f32.mrf.mxu1 }
 0x294   : > { %v506_v27 = vsel %vm459_vm2, %v501_v25, -inf }
 0x295   : > { %507 = vmax.xlane.f32.xlu1 %v506_v27  ;;  %v503_v28 = vpop.f32.mrf.mxu1 }
 0x297   : > { %v1511_v29 = vpop.f32.mrf.mxu1 }
 0x299   : > { %v613_v30 = vpop.f32.mrf.mxu1 }
 0x29a   : > { %v614_v31 = vadd.f32 %v613_v30, %v2219_v23 }
 0x29b   : > { %v1522_v32 = vpop.f32.mrf.mxu1 }
 0x29c   : > { %v619_v33 = vsel %vm459_vm2, %v614_v31, -inf }
 0x29d   : > { %620 = vmax.xlane.f32.xlu0 %v619_v33  ;;  %v616_v34 = vpop.f32.mrf.mxu1 }
 0x29f   : > { %v1523_v35 = vpop.f32.mrf.mxu1 }
 0x31e   : > { %v508_v36 = vpop.xlane.xlu1 %507 }
 0x31f   : > { %v509_v37 = vsub.f32 %v501_v25, %v508_v36 }
 0x321   : > { %v510_v38 = vmul.f32 1.442695, %v509_v37 }
 0x323   : > { %1698 = vpow2.f32 %v510_v38 }
 0x326   : > { %v621_v39 = vpop.xlane.xlu0 %620 }
 0x327   : > { %v622_v40 = vsub.f32 %v614_v31, %v621_v39 }
 0x329   : > { %v623_v41 = vmul.f32 1.442695, %v622_v40 }
 0x32b   : > { %1700 = vpow2.f32 %v623_v41 }
 0x330   : > { %v1699_v42 = vpop.eup %1698 }
 0x331   : > { %v512_v43 = vsel %vm459_vm2, %v1699_v42, 0.0 }
 0x332   : > { %513 = vadd.xlane.f32.xlu0 %v512_v43 }
 0x338   : > { %v1701_v44 = vpop.eup %1700 }
 0x339   : > { %v625_v45 = vsel %vm459_vm2, %v1701_v44, 0.0 }
 0x33a   : > { %626 = vadd.xlane.f32.xlu1 %v625_v45 }
 0x348   : > { %518 = vrot.lane.b32.xlu0 %v2200_v10, %s1943_s12  ;;  %s1951_s12 = smov [#allocation11]  }
 0x34b   : > { %631 = vrot.lane.b32.xlu1 %v2200_v10, %s1944_s19 }
 0x34c   : > { %772 = vrot.lane.b32.xlu0 %v2202_v12, %s1945_s22 }
 0x34f   : > { %774 = vrot.lane.b32.xlu1 %v2200_v10, %s1946_s4 }
 0x3bb   : > { %v514_v46 = vpop.xlane.xlu0 %513 }
 0x3bc   : > { %1702 = vrcp.f32 %v514_v46 }
 0x3bf   : > { %v519_v47 = vpop.permute.xlu0 %518 }
 0x3c0   : > { %v525_v48 = vsel %vm523_vm4, %v519_v47, 0 }
 0x3c1   : > { %1513 = vmatpush3.bf16.msra.mxu0 %v525_v48 }
 0x3c2   : > { %1524 = vmatprep.subr.bf16.mxu0 %v1937_v0 }
 0x3c3   : > { %v627_v49 = vpop.xlane.xlu1 %626  ;;  %v773_v14 = vpop.permute.xlu0 %772 }
 0x3c4   : > { %1704 = vrcp.f32 %v627_v49 }
 0x3c7   : > { %v632_v52 = vpop.permute.xlu1 %631 }
 0x3c8   : > { %v637_v54 = vsel %vm523_vm4, %v632_v52, 0 }
 0x3c9   : > { %v1703_v50 = vpop.eup %1702 }
 0x3ca   : > { %v516_v51 = vmul.f32 %v1703_v50, %v1699_v42 }
 0x3cb   : > { %v775_v5 = vpop.permute.xlu1 %774 }
 0x3cc   : > { %v517_v53 = vpack.c.bf16 %v516_v51, %v516_v51  ;;  %v780_v9 = vsel %vm459_vm2, %v775_v5, 0 }
 0x3ce   : > { %1515 = vmatmul.mubr.msk.bf16.vlgmr.msra.gmra.mxu0 %vm459_vm2, %v517_v53 }
 0x3cf   : > { %1525 = vmatpush3.bf16.msra.mxu0 %v637_v54  ;;  %1526 = vmatprep.mubr.msk.bf16.mxu0 %vm1938_vm0, %v1937_v0 }
 0x3d0   : > { %1536 = vmatprep.subr.bf16.mxu0 %v1937_v0 }
 0x3d1   : > { %v1705_v55 = vpop.eup %1704 }
 0x3d2   : > { %v629_v56 = vmul.f32 %v1705_v55, %v1701_v44  ;;  %v454_v44 = vld [vmem:[#allocation8 + $0x8] sm:$0xf] }
 0x3d3   : > { %v887_v45 = vsel %vm523_vm4, %v454_v44, 0  ;;  %v1697_v44 = vld [vmem:[#allocation10 + $0x10] sm:$0xff]  }
 0x3d4   : > { %v630_v57 = vpack.c.bf16 %v629_v56, %v629_v56 }
 0x3d6   : > { %1527 = vmatmul.mubr.msk.bf16.vlgmr.msra.gmra.mxu0 %vm459_vm2, %v630_v57 }
 0x3d7   : > { %1538 = vmatprep.mubr.msk.bf16.mxu0 %vm1938_vm0, %v1937_v0  ;;  %1537 = vmatpush3.bf16.msra.mxu0 %v730_v59 }
 0x3d8   : > { %1548 = vmatprep.subr.bf16.mxu0 %v1937_v0 }
 0x48e   : > { %v561_v62 = vpop.f32.mrf.mxu0 }
 0x48f   : > { %v567_v63 = vpack.c.bf16 %v561_v62, %v561_v62 }
 0x490   : > { %v1516_v1 = vpop.f32.mrf.mxu0 }
 0x491   : > { %1539 = vmatmul.mubr.msk.bf16.vlgmr.msra.gmra.mxu0 %vm459_vm2, %v567_v63 }
 0x492   : > { %v564_v2 = vpop.f32.mrf.mxu0  ;;  %1550 = vmatprep.mubr.msk.bf16.mxu0 %vm1938_vm0, %v1937_v0 }
 0x494   : > { %v1517_v4 = vpop.f32.mrf.mxu0 }
 0x495   : > { %v455_v4 = vld [vmem:[#allocation8 + $0xc] sm:$0xf] }
 0x496   : > { %v673_v6 = vpop.f32.mrf.mxu0 }
 0x497   : > { %v679_v7 = vpack.c.bf16 %v673_v6, %v673_v6 }
 0x498   : > { %v1528_v8 = vpop.f32.mrf.mxu0 }
 0x499   : > { %1533 = vmatmul.mubr.msk.bf16.vlgmr.msra.gmra.mxu1 %vm459_vm2, %v679_v7 }
 0x49a   : > { %1543 = vmatpush3.bf16.xpose.msra.mxu1 %v780_v9  ;;  %v676_v11 = vpop.f32.mrf.mxu0  ;;  %1544 = vmatprep.mubr.msk.bf16.mxu1 %vm1938_vm0, %v1937_v0 }
 0x49b   : > { %1554 = vmatprep.subr.bf16.mxu1 %v1937_v0 }
 0x49c   : > { %v1529_v13 = vpop.f32.mrf.mxu0 }
 0x4a1   : > { %1545 = vmatmul.mubr.msk.bf16.vlgmr.msra.gmra.mxu1 %vm459_vm2, %v773_v14 }
 0x4a2   : > { %1556 = vmatprep.mubr.msk.bf16.mxu1 %vm1938_vm0, %v1937_v0  ;;  %1555 = vmatpush3.bf16.msra.mxu1 %v887_v45  ;;  %v1451_v45 = vld [vmem:[%s2368_s6 + $0x3] ss:$0 sm:$0xff] }
 0x4a3   : > { %1566 = vmatprep.subr.bf16.mxu1 %v1937_v0 }
 0x551   : > { %v766_v15 = vpop.f32.mrf.mxu0 }
 0x553   : > { %v1540_v16 = vpop.f32.mrf.mxu0 }
 0x555   : > { %v769_v17 = vpop.f32.mrf.mxu0 }
 0x557   : > { %v1541_v18 = vpop.f32.mrf.mxu0 }
 0x559   : > { %v720_v19 = vpop.f32.mrf.mxu1 }
 0x55a   : > { %v2256_v20 = vadd.f32 %v766_v15, %v720_v19  ;;  %v1448_v19 = vld [vmem:[%s2368_s6] ss:$0 sm:$0xff] }
 0x55b   : > { %v1534_v21 = vpop.f32.mrf.mxu1 }
 0x55d   : > { %v723_v22 = vpop.f32.mrf.mxu1 }
 0x55f   : > { %v1535_v24 = vpop.f32.mrf.mxu1 }
 0x561   : > { %v816_v25 = vpop.f32.mrf.mxu1 }
 0x562   : > { %v817_v26 = vadd.f32 %v816_v25, %v2219_v23 }
 0x563   : > { %v1546_v27 = vpop.f32.mrf.mxu1 }
 0x564   : > { %v822_v28 = vsel %vm459_vm2, %v817_v26, -inf }
 0x565   : > { %823 = vmax.xlane.f32.xlu1 %v822_v28  ;;  %v819_v29 = vpop.f32.mrf.mxu1 }
 0x567   : > { %v1547_v30 = vpop.f32.mrf.mxu1 }
 0x576   : > { %932 = vrot.lane.b32.xlu1 %v2200_v10, %s1947_s21 }
 0x57a   : > { %930 = vrot.lane.b32.xlu1 %v2202_v12, %s1948_s23 }
 0x5ee   : > { %v824_v31 = vpop.xlane.xlu1 %823 }
 0x5ef   : > { %v825_v32 = vsub.f32 %v817_v26, %v824_v31 }
 0x5f1   : > { %v826_v33 = vmul.f32 1.442695, %v825_v32 }
 0x5f2   : > { %v933_v40 = vpop.permute.xlu1 %932 }
 0x5f3   : > { %1706 = vpow2.f32 %v826_v33  ;;  %v938_v42 = vsel %vm459_vm2, %v933_v40, 0  ;;  %v1694_v33 = vld [vmem:[#allocation10 + $0x8] sm:$0xff]  }
 0x5f6   : > { %v931_v43 = vpop.permute.xlu1 %930 }
 0x600   : > { %v1707_v34 = vpop.eup %1706 }
 0x601   : > { %v828_v35 = vsel %vm459_vm2, %v1707_v34, 0.0 }
 0x602   : > { %829 = vadd.xlane.f32.xlu0 %v828_v35 }
 0x618   : > { %834 = vrot.lane.b32.xlu0 %v2200_v10, %s1949_s9 }
 0x68b   : > { %v830_v36 = vpop.xlane.xlu0 %829 }
 0x68c   : > { %1708 = vrcp.f32 %v830_v36 }
 0x68f   : > { %v835_v37 = vpop.permute.xlu0 %834 }
 0x690   : > { %v840_v38 = vsel %vm523_vm4, %v835_v37, 0 }
 0x691   : > { %1549 = vmatpush3.bf16.msra.mxu0 %v840_v38  ;;  %v1449_v38 = vld [vmem:[%s2368_s6 + $0x1] ss:$0 sm:$0xff] }
 0x692   : > { %1560 = vmatprep.subr.bf16.mxu0 %v1937_v0 }
 0x699   : > { %v1709_v12 = vpop.eup %1708 }
 0x69a   : > { %v832_v39 = vmul.f32 %v1709_v12, %v1707_v34  ;;  %v1695_v34 = vld [vmem:[#allocation10] sm:$0xff]  }
 0x69c   : > { %v833_v41 = vpack.c.bf16 %v832_v39, %v832_v39  ;;  %v1450_v39 = vld [vmem:[%s2368_s6 + $0x2] ss:$0 sm:$0xff] }
 0x69e   : > { %1551 = vmatmul.mubr.msk.bf16.vlgmr.msra.gmra.mxu0 %vm459_vm2, %v833_v41 }
 0x69f   : > { %1561 = vmatpush3.bf16.xpose.msra.mxu0 %v938_v42  ;;  %1562 = vmatprep.mubr.msk.bf16.mxu0 %vm1938_vm0, %v1937_v0 }
 0x6a0   : > { %1572 = vmatprep.subr.bf16.mxu0 %v1937_v0 }
 0x6a6   : > { %1563 = vmatmul.mubr.msk.bf16.vlgmr.msra.gmra.mxu0 %vm459_vm2, %v931_v43  ;;  %v1696_v43 = vld [vmem:[#allocation10 + $0x18] sm:$0xff]  }
 0x6a7   : > { %1574 = vmatprep.mubr.msk.bf16.mxu0 %vm1938_vm0, %v1937_v0 }
 0x75e   : > { %v876_v46 = vpop.f32.mrf.mxu0 }
 0x75f   : > { %v882_v47 = vpack.c.bf16 %v876_v46, %v876_v46 }
 0x760   : > { %v1552_v48 = vpop.f32.mrf.mxu0 }
 0x761   : > { %1557 = vmatmul.mubr.msk.bf16.vlgmr.msra.gmra.mxu1 %vm459_vm2, %v882_v47 }
 0x762   : > { %v879_v49 = vpop.f32.mrf.mxu0  ;;  %1568 = vmatprep.mubr.msk.bf16.mxu1 %vm1938_vm0, %v1937_v0 }
 0x764   : > { %v1553_v50 = vpop.f32.mrf.mxu0 }
 0x766   : > { %v974_v51 = vpop.f32.mrf.mxu0 }
 0x767   : > { %v975_v52 = vadd.f32 %v974_v51, %v2219_v23 }
 0x768   : > { %v1564_v53 = vpop.f32.mrf.mxu0 }
 0x769   : > { %v980_v54 = vsel %vm459_vm2, %v975_v52, -inf  ;;  %v1455_v53 = vld [vmem:[%s2368_s6 + $0x4] ss:$0 sm:$0xff] }
 0x76a   : > { %981 = vmax.xlane.f32.xlu0 %v980_v54  ;;  %v977_v55 = vpop.f32.mrf.mxu0 }
 0x76c   : > { %v1565_v56 = vpop.f32.mrf.mxu0 }
 0x780   : > { %992 = vrot.lane.b32.xlu0 %v2200_v10, %s1950_s11  ;;  %v1045_v10 = vsel %vm523_vm4, %v455_v4, 0  ;;  %s1462_s11 = sshll.u32 %s2013_s28, 7  ;;  %s1856_s28 = sshll.u32 %s1951_s12, 4  ;;  %s1857_s28 = int_to_ptr.vmem [resolvable:$false] %s1856_s28 }
 0x781   : > { %1573 = vmatpush3.bf16.msra.mxu0 %v1045_v10  ;;  %s1292_s10 = scalar_lea.hbm %s2369_s7, %s1462_s11  ;;  %s1858_s29 = scalar_lea.vmem %s1857_s28, 256 }
 0x782   : > { %1586 = vmatprep.subr.bf16.mxu0 %v1937_v0  ;;  %p1859_p7 = scmp.lt.s32.totalorder %s1295_s13, %s1857_s28  ;;  %p1860_p9 = scmp.lt.s32.totalorder %s1858_s29, %s1852_s18 }
 0x784   : > { %p1861_p8 = por %p1860_p9, %p1859_p7 }
 0x786   : > { %p1862_p10 = pnand %p1861_p8, %p1855_p3 }
 0x7f3   : > { %v982_v57 = vpop.xlane.xlu0 %981 }
 0x7f4   : > { %v983_v58 = vsub.f32 %v975_v52, %v982_v57 }
 0x7f6   : > { %v984_v59 = vmul.f32 1.442695, %v983_v58 }
 0x7f7   : > { %v993_v60 = vpop.permute.xlu0 %992 }
 0x7f8   : > { %1710 = vpow2.f32 %v984_v59  ;;  %v998_v61 = vsel %vm523_vm4, %v993_v60, 0 }
 0x7f9   : > { %1567 = vmatpush3.bf16.msra.mxu1 %v998_v61 }
 0x7fa   : > { %1578 = vmatprep.subr.bf16.mxu1 %v1937_v0 }
 0x805   : > { %v1711_v23 = vpop.eup %1710 }
 0x806   : > { %v986_v62 = vsel %vm459_vm2, %v1711_v23, 0.0 }
 0x807   : > { %987 = vadd.xlane.f32.xlu1 %v986_v62 }
 0x821   : > { %v923_v63 = vpop.f32.mrf.mxu1 }
 0x822   : > { %v929_v1 = vadd.f32 %v923_v63, %v2256_v20 }
 0x823   : > { %v1558_v2 = vpop.f32.mrf.mxu1 }
 0x825   : > { %v926_v5 = vpop.f32.mrf.mxu1 }
 0x826   : > { %v1459_v5 = vld [vmem:[%s2368_s6 + $0x5] ss:$0 sm:$0xff] }
 0x827   : > { %v1559_v6 = vpop.f32.mrf.mxu1 }
 0x890   : > { %v988_v7 = vpop.xlane.xlu1 %987 }
 0x891   : > { %1712 = vrcp.f32 %v988_v7  ;;  %v1460_v7 = vld [vmem:[%s2368_s6 + $0x6] ss:$0 sm:$0xff] }
 0x89e   : > { %v1713_v8 = vpop.eup %1712 }
 0x89f   : > { %v990_v9 = vmul.f32 %v1713_v8, %v1711_v23 }
 0x8a1   : > { %v991_v11 = vpack.c.bf16 %v990_v9, %v990_v9 }
 0x8a3   : > { %1569 = vmatmul.mubr.msk.bf16.vlgmr.msra.gmra.mxu1 %vm459_vm2, %v991_v11 }
 0x8a4   : > { %1582 = vmatprep.mubr.msk.bf16.mxu1 %vm1938_vm0, %v1937_v0  ;;  %1579 = vmatpush3.bf16.msra.mxu1 %v1694_v33 }
 0x8a5   : > { %1580 = vmatprep.subr.bf16.mxu1 %v1937_v0 }
 0x8a8   : > { %1581 = vmatpush3.bf16.msra.mxu1 %v1695_v34 }
 0x963   : > { %v1034_v13 = vpop.f32.mrf.mxu1 }
 0x964   : > { %v1040_v14 = vpack.c.bf16 %v1034_v13, %v1034_v13 }
 0x965   : > { %v1570_v15 = vpop.f32.mrf.mxu1 }
 0x966   : > { %1575 = vmatmul.mubr.msk.bf16.vlgmr.msra.gmra.mxu0 %vm459_vm2, %v1040_v14 }
 0x967   : > { %v1037_v16 = vpop.f32.mrf.mxu1  ;;  %1590 = vmatprep.mubr.msk.bf16.mxu0 %vm1938_vm0, %v1937_v0  ;;  %1587 = vmatpush3.bf16.msra.mxu0 %v1696_v43 }
 0x968   : > { %1588 = vmatprep.subr.bf16.mxu0 %v1937_v0 }
 0x969   : > { %v1571_v17 = vpop.f32.mrf.mxu1 }
 0x96b   : > { %1589 = vmatpush3.bf16.msra.mxu0 %v1697_v44 }
 0xa26   : > { %v1081_v18 = vpop.f32.mrf.mxu0 }
 0xa27   : > { %v1087_v20 = vadd.f32 %v1081_v18, %v929_v1 }
 0xa28   : > { %v1576_v21 = vpop.f32.mrf.mxu0 }
 0xa29   : > { %v1099_v22 = vadd.f32 %v1448_v19, %v1087_v20 }
 0xa2a   : > { %v1084_v24 = vpop.f32.mrf.mxu0 }
 0xa2b   : > { %v1100_v25 = vadd.f32 %v1099_v22, %v2188_v3 }
 0xa2c   : > { %v1577_v26 = vpop.f32.mrf.mxu0 }
 0xa2d   : > { %v1101_v27 = vsel %vm400_vm1, %v1100_v25, 0.0 }
 0xa2e   : > { %1102 = vadd.xlane.f32.xlu1 %v1101_v27 }
 0xab7   : > { %v1103_v28 = vpop.xlane.xlu1 %1102 }
 0xab8   : > { %v1105_v29 = vmul.f32 0.03125, %v1103_v28 }
 0xaba   : > { %v1106_v30 = vsub.f32 %v1100_v25, %v1105_v29 }
 0xabc   : > { %v1107_v31 = vmul.f32 %v1106_v30, %v1106_v30 }
 0xabe   : > { %v1108_v32 = vsel %vm400_vm1, %v1107_v31, 0.0 }
 0xabf   : > { %1109 = vadd.xlane.f32.xlu1 %v1108_v32 }
 0xb48   : > { %v1110_v35 = vpop.xlane.xlu1 %1109 }
 0xb49   : > { %v1111_v36 = vmul.f32 0.03125, %v1110_v35 }
 0xb4b   : > { %v1112_v3 = vadd.f32 1e-05, %v1111_v36 }
 0xb4d   : > { %1714 = vrsqrt.f32 %v1112_v3 }
 0xb5a   : > { %v1715_v37 = vpop.eup %1714 }
 0xb5b   : > { %v1114_v12 = vmul.f32 %v1715_v37, %v1106_v30 }
 0xb5d   : > { %v1119_v40 = vmul.f32 %v1449_v38, %v1114_v12 }
 0xb5f   : > { %v1124_v41 = vadd.f32 %v1450_v39, %v1119_v40 }
 0xb61   : > { %v1125_v42 = vpack.c.bf16 %v1124_v41, %v1124_v41 }
 0xb63   : > { %1583 = vmatmul.mubr.msk.bf16.vlgmr.msra.gmra.mxu1 %vm400_vm1, %v1125_v42 }
 0xc23   : > { %v1183_v46 = vpop.f32.mrf.mxu1 }
 0xc24   : > { %v1184_v47 = vadd.f32 %v1451_v45, %v1183_v46 }
 0xc25   : > { %v1584_v48 = vpop.f32.mrf.mxu1 }
 0xc26   : > { %v1189_v49 = vmax.f32 %v1184_v47, 0.0 }
 0xc27   : > { %v1186_v50 = vpop.f32.mrf.mxu1 }
 0xc28   : > { %v1190_v51 = vpack.c.bf16 %v1189_v49, %v1189_v49 }
 0xc29   : > { %v1585_v52 = vpop.f32.mrf.mxu1 }
 0xc2a   : > { %1591 = vmatmul.mubr.msk.bf16.vlgmr.msra.gmra.mxu0 %vm400_vm1, %v1190_v51 }
 0xcea   : > { %v1249_v0 = vpop.f32.mrf.mxu0 }
 0xceb   : > { %v1250_v54 = vadd.f32 %v1455_v53, %v1249_v0 }
 0xcec   : > { %v1592_v55 = vpop.f32.mrf.mxu0 }
 0xced   : > { %v1255_v56 = vadd.f32 %v1250_v54, %v1124_v41 }
 0xcee   : > { %v1252_v57 = vpop.f32.mrf.mxu0 }
 0xcef   : > { %v1256_v58 = vsel %vm400_vm1, %v1255_v56, 0.0 }
 0xcf0   : > { %1257 = vadd.xlane.f32.xlu1 %v1256_v58  ;;  %v1593_v59 = vpop.f32.mrf.mxu0 }
 0xd79   : > { %v1258_v60 = vpop.xlane.xlu1 %1257 }
 0xd7a   : > { %v1259_v61 = vmul.f32 0.03125, %v1258_v60 }
 0xd7c   : > { %v1260_v23 = vsub.f32 %v1255_v56, %v1259_v61 }
 0xd7e   : > { %v1261_v62 = vmul.f32 %v1260_v23, %v1260_v23 }
 0xd80   : > { %v1262_v63 = vsel %vm400_vm1, %v1261_v62, 0.0 }
 0xd81   : > { %1263 = vadd.xlane.f32.xlu1 %v1262_v63 }
 0xe0a   : > { %v1264_v1 = vpop.xlane.xlu1 %1263 }
 0xe0b   : > { %v1265_v2 = vmul.f32 0.03125, %v1264_v1 }
 0xe0d   : > { %v1266_v4 = vadd.f32 1e-05, %v1265_v2 }
 0xe0f   : > { %1716 = vrsqrt.f32 %v1266_v4 }
 0xe1c   : > { %v1717_v10 = vpop.eup %1716 }
 0xe1d   : > { %v1268_v6 = vmul.f32 %v1717_v10, %v1260_v23 }
 0xe1f   : > { %v1273_v8 = vmul.f32 %v1459_v5, %v1268_v6 }
 0xe21   : > { %v1278_v9 = vadd.f32 %v1460_v7, %v1273_v8 }
 0xe23   : > { %1279 = vst.msk [vmem:[%s373_s2] sm:$0xff] %vm400_vm1, %v1278_v9 }
 0xe24   : > { %1865 = shalt.err (!%p1862_p10)
}
 0xe25   : > { %s1866_s19 = scalar_lea.hbm %s1292_s10, 128  ;;  %s1870_s4 = scalar_lea.hbm %s2369_s7, 256 }
 0xe26   : > { %p1867_p13 = scmp.ne.s32.totalorder %s1292_s10, %s1866_s19  ;;  %p1871_p2 = scmp.lt.s32.totalorder %s1292_s10, %s2369_s7 }
 0xe27   : > { %p1872_p4 = scmp.lt.s32.totalorder %s1870_s4, %s1866_s19 }
 0xe28   : > { %p1868_p1 = pnand %p1867_p13, %p2394_p0 }
 0xe29   : > { %p1873_p6 = por %p1872_p4, %p1871_p2 }
 0xe2a   : > { %p1869_p11 = pneg %p1868_p1 }
 0xe2c   : > { %p1874_p12 = pnand %p1873_p6, %p1869_p11 }
 0xe2e   : > { %1877 = shalt.err (!%p1874_p12)
}
 0xe2f   : > { %1610 = dma.vmem_to_hbm [thread:$0]  (%p2394_p0), %s1295_s13, 128, %s1292_s10, %s1281_s15  }
 0xe30 PF: > { %s1306_s9 = sand.u32 1, %s1916_s24   ;;  %p2395_p5 = scmp.ne.s32.totalorder %s2378_s8, 0 }
 0xe31   : > { %p2396_p3 = scmp.ge.s32.totalorder %s1928_s27, 2  ;;  %s1307_s11 = scalar_lea.sflag [#allocation4], %s1306_s9 }
 0xe33   : > { %p1630_p7 = pnand %p2396_p3, %p2395_p5 }
 0xe35   : > { %p1631_p9 = pneg %p1630_p7 }
 0xe37   : > { %1911 = dma.done.wait (%p1631_p9), %s1307_s11, 128  }
 0xe38   : > { %1913 = vsyncadd (%p1631_p9), %s1307_s11, 4294967168  ;;  %p24_p8 = scmp.ge.s32.totalorder %s2072_s14, 4   ;;  %s2397_s24 = smov %s1920_s25 }
 0xe39   : > { %s2398_s25 = smov %s1924_s26  ;;  %s2399_s26 = smov %s2082_s17 }
 0xe3a   : > { %s2400_s27 = smov %s2072_s14  ;;  %26 = sbr.rel (!%p24_p8) target bundleno = 12 (0xc), region = 119 }
 0xe3f   :  { %1312 = vsyncpa [#allocation3], 1 }
 0xe40   :  { %1314 = vsyncpa [#allocation3 + $0x1], 1 }
 0xe41   :  { %1315 = vsyncpa [#allocation6], 1 }
 0xe42   :  { %1317 = vsyncpa [#allocation6 + $0x1], 1 }
 0xe43   :  { %1318 = vsyncpa [#allocation9], 1 }
 0xe44   :  { %1319 = vsyncpa [#allocation4], 1 }
 0xe45   :  { %1321 = vsyncpa [#allocation4 + $0x1], 1 }

</bundles_post_ra>
